<compile_context>
chip_gen: v7x
topology: tpu7x:2x2x1
jax: 0.10.0
libtpu: 0.0.40
codegen_flags: <defaults>
</compile_context>

<pallas_src>
import jax
import jax.numpy as jnp
from jax import lax
from jax.experimental import pallas as pl
from jax.experimental.pallas import tpu as pltpu


# --------------------------------------------------------------------------- #
# Kernel
# --------------------------------------------------------------------------- #
def se_kernel(x_ref, w1_ref, w2_ref, o_ref):
    # x : (TB, Cp)  -- batch tile (pipelined, lane-dense: Cp % 128 == 0)
    # w1: (H, Cp)   -- nn.Linear(C, H).weight, native layout, VMEM-resident
    # w2: (Cp, H)   -- nn.Linear(H, C).weight, native layout, VMEM-resident
    x = x_ref[...]

    # Squeeze (avg-pool over a length-1 axis) is the identity -> y0 = x.
    # h = relu(x @ W1^T): contract x's C with w1's C on the MXU, f32 accumulate.
    h = lax.dot_general(
        x, w1_ref[...],
        dimension_numbers=(((1,), (1,)), ((), ())),
        preferred_element_type=jnp.float32)
    h = jnp.maximum(h, 0.0)

    # z = h @ W2^T: contract h's H with w2's H (feed MXU in the weight dtype;
    # the bf16 downcast of h is acceptable for an SE gate).
    z = lax.dot_general(
        h.astype(w2_ref.dtype), w2_ref[...],
        dimension_numbers=(((1,), (1,)), ((), ())),
        preferred_element_type=jnp.float32)

    # sigmoid(z) = 1 / (1 + exp(-z)): exp goes to the EUP slot. approx=False to
    # bit-match the reference; flip to approx=True in production (gate precision
    # is irrelevant) to route the reciprocal onto the EUP as well.
    y = pl.reciprocal(1.0 + jnp.exp(-z), approx=False)

    # Epilogue multiply in the input dtype (bf16 VALU on v6e/v7x; f32 otherwise).
    o_ref[...] = (x * y.astype(x.dtype)).astype(o_ref.dtype)


# --------------------------------------------------------------------------- #
# Tiling helpers
# --------------------------------------------------------------------------- #
def _sublane_multiple(dtype):
    # f32 -> 8, bf16 -> 16, int8/fp8 -> 32 (sub-32-bit dtypes pack along sublanes).
    return max(8, 32 // jnp.dtype(dtype).itemsize)


def _vmem_capacity_bytes():
    """Per-core VMEM capacity for this generation (conservative fallback)."""
    try:
        cap = getattr(pltpu.get_tpu_info(), "vmem_capacity_bytes", None)
        if cap:
            return int(cap)
    except Exception:
        pass
    return 64 * 1024 * 1024  # v7x per-TC VMEM; safe lower bound for v5e/v6e too


def _pick_block_b(b, cp, dtype, resident_weight_bytes, vmem_cap_bytes):
    """Largest dtype-aligned batch tile that fits the pipeline VMEM budget."""
    itemsize = jnp.dtype(dtype).itemsize
    sub = _sublane_multiple(dtype)
    if b <= sub:
        return b  # single whole-batch block; can't split further

    # ~70% of this generation's VMEM for the pipeline, minus the double-buffered
    # resident weights; per batch row: 2x-buffered (x + out) tiles plus the f32
    # h/z/y temporaries (~12 bytes/lane of slack).
    budget = max(int(0.70 * vmem_cap_bytes) - 2 * resident_weight_bytes,
                 4 * 1024 * 1024)
    per_row = 4 * cp * itemsize + 12 * cp
    max_tb = max(sub, (budget // per_row) // sub * sub)

    # Keep the grid length >= 2 so the "parallel" batch axis spans both of
    # v7x's TensorCores and the pipeline has something to overlap; cost on
    # single-TC v5e/v6e is one extra ~0.35 us grid step.
    half_b = ((b + 1) // 2 + sub - 1) // sub * sub
    tb = max(sub, min(max_tb, half_b))
    return min(tb, b)


# --------------------------------------------------------------------------- #
# Wrapper
# --------------------------------------------------------------------------- #
def se_layer(x, w1, w2, block_b=None):
    """x: (B, C); w1 = nn.Linear(C, H).weight (H, C); w2 = nn.Linear(H, C).weight (C, H)."""
    b, c = x.shape
    hdim, c1 = w1.shape
    assert c1 == c and w2.shape == (c, hdim)

    # Consistent MXU operand dtypes (weights follow the activation dtype).
    if w1.dtype != x.dtype:
        w1 = w1.astype(x.dtype)
    if w2.dtype != x.dtype:
        w2 = w2.astype(x.dtype)

    # Lane-dense channel axis: pad C up to a multiple of 128 so x/out blocks use
    # unmasked full-lane stores (the dominant cost in this store-bound kernel).
    # Padded x columns are zero => padded outputs are zero and sliced away.
    # Production SE layers should have C % 128 == 0, making this a no-op.
    cp = ((c + 127) // 128) * 128
    if cp != c:
        x_p = jnp.pad(x, ((0, 0), (0, cp - c)))
        w1_p = jnp.pad(w1, ((0, 0), (0, cp - c)))
        w2_p = jnp.pad(w2, ((0, cp - c), (0, 0)))
    else:
        x_p, w1_p, w2_p = x, w1, w2

    itemsize = jnp.dtype(x.dtype).itemsize
    weight_bytes = 2 * hdim * cp * itemsize
    vmem_cap = _vmem_capacity_bytes()
    if block_b is None:
        block_b = _pick_block_b(b, cp, x.dtype, weight_bytes, vmem_cap)
    grid = (pl.cdiv(b, block_b),)  # ragged last block handled by Pallas masking

    cost = pl.CostEstimate(
        flops=4 * b * cp * hdim,                       # two (B,Cp)x(Cp/H) matmuls
        transcendentals=b * cp,                        # one exp per element
        bytes_accessed=(2 * b * cp + 2 * hdim * cp) * itemsize)

    out_p = pl.pallas_call(
        se_kernel,
        out_shape=jax.ShapeDtypeStruct((b, cp), x.dtype),
        grid_spec=pltpu.PrefetchScalarGridSpec(
            num_scalar_prefetch=0,
            grid=grid,
            in_specs=[
                pl.BlockSpec((block_b, cp), lambda i: (i, 0)),  # x tile, pipelined
                pl.BlockSpec((hdim, cp), lambda i: (0, 0)),     # W1 VMEM-resident
                pl.BlockSpec((cp, hdim), lambda i: (0, 0)),     # W2 VMEM-resident
            ],
            out_specs=pl.BlockSpec((block_b, cp), lambda i: (i, 0)),
        ),
        compiler_params=pltpu.CompilerParams(
            dimension_semantics=("parallel",),                   # megacore on v7x
            vmem_limit_bytes=int(min(0.9 * vmem_cap, 127 * 1024 * 1024)),
        ),
        cost_estimate=cost,
    )(x_p, w1_p, w2_p)

    return out_p if cp == c else out_p[:, :c]


def se_layer_ref(x, w1, w2):
    """Pure-JAX reference matching the PyTorch forward (f32 internals)."""
    xf = x.astype(jnp.float32)
    y = jnp.maximum(xf @ w1.T.astype(jnp.float32), 0.0)
    y = jax.nn.sigmoid(y @ w2.T.astype(jnp.float32))
    return (xf * y).astype(x.dtype)


if __name__ == "__main__":
    B, C, REDUCTION = 16, 64, 16
    H = C // REDUCTION  # 4

    key = jax.random.PRNGKey(0)
    kx, k1, k2 = jax.random.split(key, 3)

    x = jax.random.normal(kx, (B, C), dtype=jnp.float32)
    # nn.Linear(C, H).weight has shape (H, C); nn.Linear(H, C).weight has (C, H).
    w1 = jax.random.normal(k1, (H, C), dtype=jnp.float32) * (1.0 / jnp.sqrt(C))
    w2 = jax.random.normal(k2, (C, H), dtype=jnp.float32) * (1.0 / jnp.sqrt(H))

    ref = se_layer_ref(x, w1, w2)

    # Auto tile: lane-dense padded channels, 2-step batch grid (both v7x TCs busy).
    out = se_layer(x, w1, w2)
    jax.block_until_ready(out)
    assert out.shape == (B, C)
    assert jnp.allclose(out, ref, atol=1e-5, rtol=1e-5)

    # Forced whole-batch block: exercises the grid=(1,) path.
    out_whole = se_layer(x, w1, w2, block_b=B)
    jax.block_until_ready(out_whole)
    assert jnp.allclose(out_whole, ref, atol=1e-5, rtol=1e-5)

    # bf16 path: exercises dtype-aware sublane rounding and the bf16 epilogue.
    xb, w1b, w2b = (a.astype(jnp.bfloat16) for a in (x, w1, w2))
    out_bf = se_layer(xb, w1b, w2b)
    jax.block_until_ready(out_bf)
    ref_bf = se_layer_ref(xb, w1b, w2b)
    assert jnp.allclose(out_bf.astype(jnp.float32), ref_bf.astype(jnp.float32),
                        atol=5e-2, rtol=5e-2)

    print("KERNEL_OK")
</pallas_src>

<mosaic_0001>
module attributes {stable_mosaic.version = 11 : i64} {
  func.func @se_kernel(%arg0: i32, %arg1: memref<8x128xf32, #tpu.memory_space<vmem>>, %arg2: memref<4x128xf32, #tpu.memory_space<vmem>>, %arg3: memref<128x4xf32, #tpu.memory_space<vmem>>, %arg4: memref<8x128xf32, #tpu.memory_space<vmem>>) attributes {dimension_semantics = [#tpu.dimension_semantics<parallel>], iteration_bounds = array<i64: 2>, scalar_prefetch = 0 : i64, scratch_operands = 0 : i64, tpu.core_type = #tpu.core_type<tc>, window_params = [{transform_indices = @transform_0, window_bounds = array<i64: 8, 128>}, {pipeline_mode = #tpu.pipeline_mode<synchronous>, transform_indices = @transform_1, window_bounds = array<i64: 4, 128>}, {pipeline_mode = #tpu.pipeline_mode<synchronous>, transform_indices = @transform_2, window_bounds = array<i64: 128, 4>}, {transform_indices = @transform_3, window_bounds = array<i64: 8, 128>}]} {
    %c0 = arith.constant 0 : index
    %c0_0 = arith.constant 0 : index
    %0 = vector.load %arg1[%c0, %c0_0] : memref<8x128xf32, #tpu.memory_space<vmem>>, vector<8x128xf32>
    %c0_1 = arith.constant 0 : index
    %c0_2 = arith.constant 0 : index
    %1 = vector.load %arg2[%c0_1, %c0_2] : memref<4x128xf32, #tpu.memory_space<vmem>>, vector<4x128xf32>
    %cst = arith.constant dense<0.000000e+00> : vector<8x4xf32>
    %2 = tpu.matmul %0, %1, %cst {dimension_numbers = #tpu.dot_dimension_numbers<[1], [1], [0], [0], [0, 0, 1, 0], [], []>} : vector<8x128xf32>, vector<4x128xf32>, vector<8x4xf32> -> vector<8x4xf32>
    %cst_3 = arith.constant 0.000000e+00 : f32
    %3 = vector.broadcast %cst_3 : f32 to vector<8x4xf32>
    %4 = arith.maximumf %2, %3 : vector<8x4xf32>
    %c0_4 = arith.constant 0 : index
    %c0_5 = arith.constant 0 : index
    %5 = vector.load %arg3[%c0_4, %c0_5] : memref<128x4xf32, #tpu.memory_space<vmem>>, vector<128x4xf32>
    %cst_6 = arith.constant dense<0.000000e+00> : vector<8x128xf32>
    %6 = tpu.matmul %4, %5, %cst_6 {dimension_numbers = #tpu.dot_dimension_numbers<[1], [1], [0], [0], [0, 0, 1, 0], [], []>} : vector<8x4xf32>, vector<128x4xf32>, vector<8x128xf32> -> vector<8x128xf32>
    %cst_7 = arith.constant 0.000000e+00 : f32
    %7 = vector.broadcast %cst_7 : f32 to vector<8x128xf32>
    %8 = arith.subf %7, %6 : vector<8x128xf32>
    %9 = math.exp %8 : vector<8x128xf32>
    %cst_8 = arith.constant 1.000000e+00 : f32
    %10 = vector.broadcast %cst_8 : f32 to vector<8x128xf32>
    %11 = arith.addf %10, %9 : vector<8x128xf32>
    %12 = tpu.reciprocal %11 : vector<8x128xf32> -> vector<8x128xf32>
    %13 = arith.mulf %0, %12 : vector<8x128xf32>
    %c0_9 = arith.constant 0 : index
    %c0_10 = arith.constant 0 : index
    %14 = vector.load %arg4[%c0_9, %c0_10] : memref<8x128xf32, #tpu.memory_space<vmem>>, vector<8x128xf32>
    tpu.vector_store %arg4[%c0_9, %c0_10], %13 {strides = array<i32>} : memref<8x128xf32, #tpu.memory_space<vmem>>, vector<8x128xf32>,
    return
  }
  func.func @transform_0(%arg0: i32) -> (i32, i32) {
    %c0_i32 = arith.constant 0 : i32
    %c0_i32_0 = arith.constant 0 : i32
    return %arg0, %c0_i32 : i32, i32
  }
  func.func @transform_1(%arg0: i32) -> (i32, i32) {
    %c0_i32 = arith.constant 0 : i32
    %c0_i32_0 = arith.constant 0 : i32
    %c0_i32_1 = arith.constant 0 : i32
    return %c0_i32, %c0_i32_0 : i32, i32
  }
  func.func @transform_2(%arg0: i32) -> (i32, i32) {
    %c0_i32 = arith.constant 0 : i32
    %c0_i32_0 = arith.constant 0 : i32
    %c0_i32_1 = arith.constant 0 : i32
    return %c0_i32, %c0_i32_0 : i32, i32
  }
  func.func @transform_3(%arg0: i32) -> (i32, i32) {
    %c0_i32 = arith.constant 0 : i32
    %c0_i32_0 = arith.constant 0 : i32
    return %arg0, %c0_i32 : i32, i32
  }
}

</mosaic_0001>

<bundles_post_ra>
// kernel: tpu_custom_call.1
= control target key start
LH: loop header
LB: loop body
LE: loop exit
PB: predicated region body
PF: predicated region fallthrough
CT: control target
= control target key end

     0   :  { %8 = vsyncpa [#allocation3], 0  ;;  %s883_s0 = inlined_call_operand.vmem [shape: f32[16,128], index: 0, kind: input, shape index: {}]   ;;  %s884_s1 = inlined_call_operand.vmem [shape: f32[4,128], index: 1, kind: input, shape index: {}]   ;;  %s885_s2 = inlined_call_operand.vmem [shape: f32[128,4], index: 2, kind: input, shape index: {}]   ;;  %s886_s3 = inlined_call_operand.hbm [shape: f32[16,128], index: 3, kind: output, shape index: {}]  }
   0x1   :  { %10 = vsyncpa [#allocation3 + $0x1], 0  ;;  %s709_s12 = smov 0   ;;  %s711_s13 = smov 0  }
   0x2   :  { %s713_s14 = smov 0   ;;  %s715_s15 = smov 0  }
   0x3 LB: > { %s730_s16 = sadd.s32 4294967295, %s683_s15   ;;  %s457_s17 = sadd.s32 4294967294, %s683_s15   ;;  %s683_s15 = sphi %s715_s15, %s894_s15   ;;  %s679_s14 = sphi %s713_s14, %s893_s14   ;;  %s675_s13 = sphi %s711_s13, %s892_s13   ;;  %s671_s12 = sphi %s709_s12, %s891_s12  }
   0x4   : > { %s734_s18 = sadd.s32 1, %s683_s15   ;;  %s91_s19 = sadd.s32 1, %s679_s14 }
   0x5   : > { %s88_s20 = ssub.s32 %s683_s15, %s734_s18  ;;  %p101_p0 = scmp.ne.s32.totalorder %s679_s14, %s675_s13 }
   0x6   : > { %p89_p1 = scmp.eq.s32.totalorder %s88_s20, 0  ;;  %p102_p2 = scmp.eq.s32.totalorder %s730_s16, 1 }
   0x7   : > { %p107_p3 = scmp.ne.s32.totalorder %s675_s13, %s671_s12  ;;  %p108_p4 = scmp.eq.s32.totalorder %s457_s17, 1 }
   0x8   : > { %s745_s21 = scalar_select %p89_p1, %s679_s14, %s91_s19  }
   0x9   : > { %p747_p5 = por %p102_p2, %p101_p0  ;;  %p751_p6 = por %p108_p4, %p107_p3 }
   0xa   : > { %p460_p7 = scmp.ge.s32.totalorder %s683_s15, 1  ;;  %p139_p8 = scmp.lt.s32.totalorder %s683_s15, 3 }
   0xc   : > { %p140_p9 = pnand %p460_p7, %p139_p8 }
   0xd   : > { %v167_v0 = vld [vmem:[%s884_s1] sm:$0xf] (!%p140_p9)  ;;  %p162_p10 = scmp.lt.s32.totalorder (!%p140_p9), %s730_s16, 1  ;;  %v685_v1 = vmov (!%p140_p9), 0.0   ;;  %vm686_vm0 = vmmov (!%p140_p9), 0   ;;  %v240_v3 = vld [vmem:[%s885_s2 + $0x8] sm:$0xff] (!%p140_p9) }
   0xe   : > { %143 = sbr.rel (%p140_p9) target bundleno = 496 (0x1f0), region = 32  ;;  %503 = vmatprep.subr.mxu0 (!%p140_p9), %v685_v1  ;;  %505 = vmatprep.mubr.msk.f32.mxu0 (!%p140_p9), %vm686_vm0, %v685_v1  ;;  %v239_v2 = vld [vmem:[%s885_s2] sm:$0xff] (!%p140_p9)  ;;  %vm255_vm1 = vcmask (!%p140_p9), 31744   ;;  %v687_v4 = vmov (!%p140_p9), 0.0|0.0   ;;  %v241_v7 = vld [vmem:[%s885_s2 + $0x10] sm:$0xff] (!%p140_p9)  ;;  %v242_v8 = vld [vmem:[%s885_s2 + $0x18] sm:$0xff] (!%p140_p9) }
   0xf   : > { %504 = vmatpush3.xpose.msra.mxu0 (!%p140_p9), %v167_v0  ;;  %543 = vmatprep.subr.bf16.mxu1 (!%p140_p9), %v687_v4  ;;  %v544_v5 = vpack.c.bf16 (!%p140_p9), %v240_v3, %v239_v2  ;;  %vm770_vm2 = vmpackc.low (!%p140_p9), %vm255_vm1, %vm255_vm1  ;;  %v548_v10 = vpack.c.bf16 (!%p140_p9), %v242_v8, %v241_v7  ;;  %v243_v11 = vld [vmem:[%s885_s2 + $0x20] sm:$0xff] (!%p140_p9)  ;;  %v244_v12 = vld [vmem:[%s885_s2 + $0x28] sm:$0xff] (!%p140_p9)  ;;  %s159_s27 = sand.u32 (!%p140_p9), 1, %s675_s13   ;;  %s481_s29 = sshll.u32 (!%p140_p9), %s730_s16, 7 }
  0x10   : > { %540 = vmatprep.mubr.msk.f32.mxu1 (!%p140_p9), %vm686_vm0, %v685_v1  ;;  %v552_v13 = vpack.c.bf16 (!%p140_p9), %v244_v12, %v243_v11  ;;  %v245_v14 = vld [vmem:[%s885_s2 + $0x30] sm:$0xff] (!%p140_p9)  ;;  %v246_v15 = vld [vmem:[%s885_s2 + $0x38] sm:$0xff] (!%p140_p9)  ;;  %v247_v17 = vld [vmem:[%s885_s2 + $0x40] sm:$0xff] (!%p140_p9)  ;;  %s461_s28 = sshll.u32 (!%p140_p9), %s159_s27, 3  ;;  %s385_s8 = scalar_lea.sflag (!%p140_p9), [#allocation3], %s159_s27 }
  0x11   : > { %546 = vmatpush3.bf16.xpose.msk.msra.mxu1 (!%p140_p9), %vm770_vm2, %v544_v5  ;;  %v556_v16 = vpack.c.bf16 (!%p140_p9), %v246_v15, %v245_v14  ;;  %v248_v18 = vld [vmem:[%s885_s2 + $0x48] sm:$0xff] (!%p140_p9)  ;;  %v249_v20 = vld [vmem:[%s885_s2 + $0x50] sm:$0xff] (!%p140_p9)  ;;  %v250_v21 = vld [vmem:[%s885_s2 + $0x58] sm:$0xff] (!%p140_p9) }
  0x12   : > { %547 = vmatprep.subr.bf16.mxu1 (!%p140_p9), %v687_v4  ;;  %v560_v19 = vpack.c.bf16 (!%p140_p9), %v248_v18, %v247_v17  ;;  %v564_v22 = vpack.c.bf16 (!%p140_p9), %v250_v21, %v249_v20  ;;  %v251_v23 = vld [vmem:[%s885_s2 + $0x60] sm:$0xff] (!%p140_p9)  ;;  %v252_v24 = vld [vmem:[%s885_s2 + $0x68] sm:$0xff] (!%p140_p9)  ;;  %v253_v26 = vld [vmem:[%s885_s2 + $0x70] sm:$0xff] (!%p140_p9) }
  0x13   : > { %v568_v25 = vpack.c.bf16 (!%p140_p9), %v252_v24, %v251_v23  ;;  %v254_v27 = vld [vmem:[%s885_s2 + $0x78] sm:$0xff] (!%p140_p9) }
  0x14   : > { %v572_v28 = vpack.c.bf16 (!%p140_p9), %v254_v27, %v253_v26 }
  0x15   : > { %s163_s30 = scalar_select %p162_p10, %s730_s16, 1 }
  0x16   : > { %s688_s16 = smov [#allocation2]  }
  0x17   : > { %s462_s4 = sshll.u32 %s163_s30, 3  ;;  %s161_s30 = scalar_lea.vmem [#allocation2], %s461_s28 }
  0x18   : > { %s165_s7 = scalar_lea.vmem %s883_s0, %s462_s4  ;;  %s398_s4 = sshll.u32 %s161_s30, 4  ;;  %s843_s4 = int_to_ptr.vmem [resolvable:$true] %s398_s4 }
  0x19   : > { %v166_v9 = vld [vmem:[%s165_s7] sm:$0xff]  ;;  %550 = vmatpush3.bf16.xpose.msk.msra.mxu1 %vm770_vm2, %v548_v10  ;;  %s841_s7 = scalar_lea.hbm %s886_s3, %s481_s29  ;;  %s621_s9 = scalar_lea.vmem %s843_s4, 128 }
  0x1a   : > { %506 = vmatmul.mubr.f32.vlgmr.msra.gmra.mrb[0].mxu0 %v166_v9  ;;  %551 = vmatprep.subr.bf16.mxu1 %v687_v4  ;;  %p622_p11 = scmp.ne.s32.totalorder %s843_s4, %s621_s9  ;;  %s625_s10 = sshll.u32 %s688_s16, 4  ;;  %s626_s10 = int_to_ptr.vmem [resolvable:$false] %s625_s10 }
  0x1b   : > { %s627_s11 = scalar_lea.vmem %s626_s10, 256  ;;  %p628_p0 = scmp.lt.s32.totalorder %s843_s4, %s626_s10 }
  0x1c   : > { %p623_p12 = pnand %p622_p11, %p747_p5  ;;  %p629_p1 = scmp.lt.s32.totalorder %s627_s11, %s621_s9 }
  0x1e   : > { %p624_p13 = pneg %p623_p12  ;;  %p630_p2 = por %p629_p1, %p628_p0 }
  0x20   : > { %p631_p3 = pnand %p630_p2, %p624_p13 }
  0x21   : > { %554 = vmatpush3.bf16.xpose.msk.msra.mxu1 %vm770_vm2, %v552_v13 }
  0x22   : > { %555 = vmatprep.subr.bf16.mxu1 %v687_v4 }
  0x29   : > { %558 = vmatpush3.bf16.xpose.msk.msra.mxu1 %vm770_vm2, %v556_v16 }
  0x2a   : > { %559 = vmatprep.subr.bf16.mxu1 %v687_v4 }
  0x31   : > { %562 = vmatpush3.bf16.xpose.msk.msra.mxu1 %vm770_vm2, %v560_v19 }
  0x32   : > { %563 = vmatprep.subr.bf16.mxu1 %v687_v4 }
  0x39   : > { %566 = vmatpush3.bf16.xpose.msk.msra.mxu1 %vm770_vm2, %v564_v22 }
  0x3a   : > { %567 = vmatprep.subr.bf16.mxu1 %v687_v4 }
  0x41   : > { %570 = vmatpush3.bf16.xpose.msk.msra.mxu1 %vm770_vm2, %v568_v25 }
  0x42   : > { %571 = vmatprep.subr.bf16.mxu1 %v687_v4 }
  0x49   : > { %574 = vmatpush3.bf16.xpose.msk.msra.mxu1 %vm770_vm2, %v572_v28 }
  0xed   : > { %v234_v29 = vpop.f32.mrb[0].mxu0 }
  0xee   : > { %v238_v30 = vmax.f32 %v234_v29, 0.0  ;;  %v507_v31 = vpop.f32.mrb[1].mxu0 }
  0xf0   : > { %541 = vmatmul.mubr.msk.f32.vlgmr.msra.gmra.mrb[0].mxu1 %vm255_vm1, %v238_v30 }
 0x1c3   : > { %v373_v32 = vpop.f32.mrb[0].mxu1 }
 0x1c4   : > { %v377_v33 = vsub.f32 0.0, %v373_v32  ;;  %v542_v34 = vpop.f32.mrb[1].mxu1 }
 0x1c6   : > { %v378_v35 = vmul.f32 1.442695, %v377_v33 }
 0x1c8   : > { %617 = vpow2.f32 %v378_v35 }
 0x1d2   : > { %v618_v36 = vpop.eup %617 }
 0x1d3   : > { %v380_v37 = vadd.f32 1.0, %v618_v36 }
 0x1d5   : > { %619 = vrcp.f32 %v380_v37 }
 0x1df   : > { %v620_v38 = vpop.eup %619 }
 0x1e0   : > { %v382_v39 = vmul.f32 %v620_v38, %v166_v9 }
 0x1e2   : > { %383 = vst [vmem:[%s161_s30] sm:$0xff] %v382_v39 }
 0x1e3   : > { %634 = shalt.err (!%p631_p3)
}
 0x1e4   : > { %s635_s17 = scalar_lea.hbm %s841_s7, 128  ;;  %s639_s24 = scalar_lea.hbm %s886_s3, 256 }
 0x1e5   : > { %p636_p4 = scmp.ne.s32.totalorder %s841_s7, %s635_s17  ;;  %p640_p9 = scmp.lt.u32.totalorder %s841_s7, %s886_s3 }
 0x1e6   : > { %p641_p10 = scmp.lt.u32.totalorder %s639_s24, %s635_s17  ;;  %p643_p12 = scmp.lt.u32.totalorder %s635_s17, %s841_s7 }
 0x1e7   : > { %p637_p7 = pnand %p636_p4, %p747_p5 }
 0x1e8   : > { %p642_p11 = por %p641_p10, %p640_p9 }
 0x1e9   : > { %p638_p8 = pneg %p637_p7 }
 0x1ea   : > { %p644_p13 = por %p643_p12, %p642_p11 }
 0x1ec   : > { %p645_p0 = pnand %p644_p13, %p638_p8 }
 0x1ee   : > { %648 = shalt.err (!%p645_p0)
}
 0x1ef   : > { %575 = dma.vmem_to_hbm [thread:$0]  (%p747_p5), %s843_s4, 128, %s841_s7, %s385_s8  }
 0x1f0 PF: > { %p581_p1 = scmp.ge.s32.totalorder %s683_s15, 2  ;;  %s410_s27 = sand.u32 1, %s671_s12  }
 0x1f1   : > { %s411_s28 = scalar_lea.sflag [#allocation3], %s410_s27 }
 0x1f2   : > { %p578_p2 = pnand %p581_p1, %p751_p6 }
 0x1f4   : > { %666 = dma.done.wait (!%p578_p2), %s411_s28, 128  }
 0x1f5   : > { %668 = vsyncadd (!%p578_p2), %s411_s28, 4294967168  ;;  %p13_p3 = scmp.ge.s32.totalorder %s734_s18, 4   ;;  %s891_s12 = smov %s675_s13 }
 0x1f6   : > { %s892_s13 = smov %s679_s14  ;;  %s893_s14 = smov %s745_s21 }
 0x1f7   : > { %s894_s15 = smov %s734_s18  ;;  %15 = sbr.rel (!%p13_p3) target bundleno = 3 (0x3), region = 67 }
 0x1fe   :  { %416 = vsyncpa [#allocation3], 1 }
 0x1ff   :  { %418 = vsyncpa [#allocation3 + $0x1], 1 }

</bundles_post_ra>
